<compile_context>
chip_gen: v5e
topology: v5e:2x2
jax: 0.10.0
libtpu: 0.0.40
codegen_flags: <defaults>
</compile_context>

<pallas_src>
import jax
import jax.numpy as jnp
from jax.experimental import pallas as pl
from jax.experimental.pallas import tpu as pltpu


def _round_up(x, m):
    return ((x + m - 1) // m) * m


def critic_mlp_kernel(x_ref, w1_ref, b1_ref, w2_ref, b2_ref, w3_ref, b3_ref,
                      out_ref):
    """Fused 3-layer MLP (Linear+ReLU x3), feature-major (batch on lanes).

    x_ref  : [3, TB]   (cat(state, action).T tile; rows 0-1 state, row 2 action)
    w1_ref : [40, 3]   b1_ref: [40, 1]
    w2_ref : [30, 40]  b2_ref: [30, 1]
    w3_ref : [1, 30]   b3_ref: [1]  (SMEM scalar)
    out_ref: [1, TB]
    """
    x = x_ref[...].astype(jnp.float32)        # [3, TB]
    w1 = w1_ref[...]                          # [40, 3]

    # Layer 1: Linear(3 -> 40) + ReLU.  K=3 would be almost all MXU padding,
    # so do it as three VPU broadcast MACs (torch.cat folded in here).
    h1 = (w1[:, 0:1] * x[0:1, :]
          + w1[:, 1:2] * x[1:2, :]
          + w1[:, 2:3] * x[2:3, :]
          + b1_ref[...])
    h1 = jnp.maximum(h1, 0.0)                 # [40, TB] f32

    # Layer 2: Linear(40 -> 30) + ReLU.  bf16 MXU operands, f32 accumulation.
    h2 = jnp.dot(w2_ref[...].astype(jnp.bfloat16), h1.astype(jnp.bfloat16),
                 preferred_element_type=jnp.float32)
    h2 = jnp.maximum(h2 + b2_ref[...], 0.0)   # [30, TB] f32

    # Layer 3: Linear(30 -> 1) + ReLU.  b3 comes in as an SMEM scalar.
    h3 = jnp.dot(w3_ref[...].astype(jnp.bfloat16), h2.astype(jnp.bfloat16),
                 preferred_element_type=jnp.float32)
    h3 = jnp.maximum(h3 + b3_ref[0], 0.0)     # [1, TB]

    out_ref[...] = h3.astype(out_ref.dtype)


def critic_forward(state, action, params):
    """state: [B, 2] f32, action: [B, 1] f32  ->  Q: [B, 1] f32."""
    w1, b1, w2, b2, w3, b3 = params
    B = state.shape[0]

    # Batch tile: multiple of 256 (fills MXU columns), capped at 8192 so the
    # whole batch is a single grid step whenever B <= 8192 (the kernel is
    # per-step-overhead bound).  At 8192 lanes the VMEM footprint is ~3-4 MB,
    # under every chip's default scoped-VMEM limit (incl. v5e's 16 MiB).
    tile_b = min(8192, _round_up(max(B, 1), 256))
    grid = (pl.cdiv(B, tile_b),)

    # Single feature-major operand [3, B] (no host-side pad; Pallas masks the
    # edge block).  XLA is allowed to fuse this concat/transpose into the
    # pallas operand via allow_input_fusion.
    x_t = jnp.concatenate([state, action], axis=1).T   # [3, B]

    const = lambda i: (0, 0)  # weights/biases stay VMEM-resident across tiles

    out_t = pl.pallas_call(
        critic_mlp_kernel,
        out_shape=jax.ShapeDtypeStruct((1, B), jnp.float32),
        grid=grid,
        in_specs=[
            pl.BlockSpec((3, tile_b), lambda i: (0, i)),        # x.T tile
            pl.BlockSpec((40, 3), const),                       # w1
            pl.BlockSpec((40, 1), const),                       # b1
            pl.BlockSpec((30, 40), const),                      # w2
            pl.BlockSpec((30, 1), const),                       # b2
            pl.BlockSpec((1, 30), const),                       # w3
            pl.BlockSpec(memory_space=pltpu.MemorySpace.SMEM),  # b3 scalar
        ],
        out_specs=pl.BlockSpec((1, tile_b), lambda i: (0, i)),
        compiler_params=pltpu.CompilerParams(
            # On v7x, switch to pltpu.CORE_PARALLEL if a profile shows the
            # batch grid not sharding across both TensorCores.
            dimension_semantics=("parallel",),
            # Let XLA fuse the concat/transpose producer into the activation
            # operand (no extra HBM pass for layout plumbing).
            allow_input_fusion=[True, False, False, False, False, False, False],
        ),
    )(x_t, w1, b1, w2, b2, w3, b3)

    # [1, B] -> [B, 1] (same contiguous data; free reshape)
    return out_t.reshape(B, 1)


def init_params(key):
    """Synthetic init mimicking nn.Linear's U(-1/sqrt(fan_in), 1/sqrt(fan_in)).

    Weights stored as [out_features, in_features] (PyTorch layout, used as the
    LHS in the feature-major kernel); biases as [out_features, 1] columns.
    """
    def linear(key, fan_in, fan_out):
        kw, kb = jax.random.split(key)
        bound = 1.0 / jnp.sqrt(fan_in)
        w = jax.random.uniform(kw, (fan_out, fan_in), jnp.float32, -bound, bound)
        b = jax.random.uniform(kb, (fan_out, 1), jnp.float32, -bound, bound)
        return w, b

    k1, k2, k3 = jax.random.split(key, 3)
    w1, b1 = linear(k1, 3, 40)    # [40, 3],  [40, 1]
    w2, b2 = linear(k2, 40, 30)   # [30, 40], [30, 1]
    w3, b3 = linear(k3, 30, 1)    # [1, 30],  [1, 1]
    return (w1, b1, w2, b2, w3, b3.reshape(1))   # b3 as a (1,) SMEM scalar


def reference_forward(state, action, params, mxu_bf16=False):
    """Pure-JAX reference (batch-major, explicit concat) for correctness.

    mxu_bf16=True mirrors the kernel's deliberate bf16 MXU casts on layers
    2-3 (f32 accumulation) so it can be compared at tight tolerance.
    """
    w1, b1, w2, b2, w3, b3 = params
    x = jnp.concatenate([state, action], axis=1)          # [B, 3]
    h1 = jnp.maximum(x @ w1.T + b1.T, 0.0)                # [B, 40]
    if mxu_bf16:
        h2 = jnp.dot(h1.astype(jnp.bfloat16), w2.T.astype(jnp.bfloat16),
                     preferred_element_type=jnp.float32)
        h2 = jnp.maximum(h2 + b2.T, 0.0)                  # [B, 30]
        h3 = jnp.dot(h2.astype(jnp.bfloat16), w3.T.astype(jnp.bfloat16),
                     preferred_element_type=jnp.float32)
        h3 = jnp.maximum(h3 + b3[None, :], 0.0)           # [B, 1]
    else:
        h2 = jnp.maximum(h1 @ w2.T + b2.T, 0.0)           # [B, 30]
        h3 = jnp.maximum(h2 @ w3.T + b3[None, :], 0.0)    # [B, 1]
    return h3


if __name__ == "__main__":
    key = jax.random.PRNGKey(0)
    k_params, k_state, k_action = jax.random.split(key, 3)

    params = init_params(k_params)

    # Small deterministic inputs: state has 2 features, action 1
    # (concat -> 3 features, matching nn.Linear(3, 40)).
    B = 8
    state = jax.random.normal(k_state, (B, 2), jnp.float32)
    action = jax.random.normal(k_action, (B, 1), jnp.float32)

    out = jax.block_until_ready(critic_forward(state, action, params))

    ref_bf16 = reference_forward(state, action, params, mxu_bf16=True)
    ref_f32 = reference_forward(state, action, params, mxu_bf16=False)

    assert out.shape == (B, 1), out.shape
    # Tight check against a reference using the same bf16-MXU / f32-acc math.
    assert jnp.allclose(out, ref_bf16, atol=1e-4, rtol=1e-4), (out, ref_bf16)
    # Loose check against pure-f32 math (bounds the deliberate bf16 error).
    assert jnp.allclose(out, ref_f32, atol=5e-2, rtol=5e-2), (out, ref_f32)

    print("KERNEL_OK")
</pallas_src>

<mosaic_0001>
module attributes {stable_mosaic.version = 11 : i64} {
  func.func @critic_mlp_kernel(%arg0: i32, %arg1: memref<3x256xf32, #tpu.memory_space<vmem>>, %arg2: memref<40x3xf32, #tpu.memory_space<vmem>>, %arg3: memref<40x1xf32, #tpu.memory_space<vmem>>, %arg4: memref<30x40xf32, #tpu.memory_space<vmem>>, %arg5: memref<30x1xf32, #tpu.memory_space<vmem>>, %arg6: memref<1x30xf32, #tpu.memory_space<vmem>>, %arg7: memref<1xf32, #tpu.memory_space<smem>>, %arg8: memref<1x256xf32, #tpu.memory_space<vmem>>) attributes {dimension_semantics = [#tpu.dimension_semantics<parallel>], iteration_bounds = array<i64: 1>, scalar_prefetch = 0 : i64, scratch_operands = 0 : i64, tpu.core_type = #tpu.core_type<tc>, window_params = [{transform_indices = @transform_0, window_bounds = array<i64: 3, 256>}, {pipeline_mode = #tpu.pipeline_mode<synchronous>, transform_indices = @transform_1, window_bounds = array<i64: 40, 3>}, {pipeline_mode = #tpu.pipeline_mode<synchronous>, transform_indices = @transform_2, window_bounds = array<i64: 40, 1>}, {pipeline_mode = #tpu.pipeline_mode<synchronous>, transform_indices = @transform_3, window_bounds = array<i64: 30, 40>}, {pipeline_mode = #tpu.pipeline_mode<synchronous>, transform_indices = @transform_4, window_bounds = array<i64: 30, 1>}, {pipeline_mode = #tpu.pipeline_mode<synchronous>, transform_indices = @transform_5, window_bounds = array<i64: 1, 30>}, {transform_indices = @transform_6, window_bounds = array<i64: 1>}, {transform_indices = @transform_7, window_bounds = array<i64: 1, 256>}]} {
    %c0 = arith.constant 0 : index
    %c0_0 = arith.constant 0 : index
    %0 = vector.load %arg1[%c0, %c0_0] : memref<3x256xf32, #tpu.memory_space<vmem>>, vector<3x256xf32>
    %c0_1 = arith.constant 0 : index
    %c0_2 = arith.constant 0 : index
    %1 = vector.load %arg2[%c0_1, %c0_2] : memref<40x3xf32, #tpu.memory_space<vmem>>, vector<40x3xf32>
    %2 = vector.extract_strided_slice %1 {offsets = [0, 0], sizes = [40, 1], strides = [1, 1]} : vector<40x3xf32> to vector<40x1xf32>
    %3 = vector.extract_strided_slice %0 {offsets = [0, 0], sizes = [1, 256], strides = [1, 1]} : vector<3x256xf32> to vector<1x256xf32>
    %4 = vector.broadcast %2 : vector<40x1xf32> to vector<40x256xf32>
    %5 = vector.broadcast %3 : vector<1x256xf32> to vector<40x256xf32>
    %6 = arith.mulf %4, %5 : vector<40x256xf32>
    %7 = vector.extract_strided_slice %1 {offsets = [0, 1], sizes = [40, 1], strides = [1, 1]} : vector<40x3xf32> to vector<40x1xf32>
    %8 = vector.extract_strided_slice %0 {offsets = [1, 0], sizes = [1, 256], strides = [1, 1]} : vector<3x256xf32> to vector<1x256xf32>
    %9 = vector.broadcast %7 : vector<40x1xf32> to vector<40x256xf32>
    %10 = vector.broadcast %8 : vector<1x256xf32> to vector<40x256xf32>
    %11 = arith.mulf %9, %10 : vector<40x256xf32>
    %12 = arith.addf %6, %11 : vector<40x256xf32>
    %13 = vector.extract_strided_slice %1 {offsets = [0, 2], sizes = [40, 1], strides = [1, 1]} : vector<40x3xf32> to vector<40x1xf32>
    %14 = vector.extract_strided_slice %0 {offsets = [2, 0], sizes = [1, 256], strides = [1, 1]} : vector<3x256xf32> to vector<1x256xf32>
    %15 = vector.broadcast %13 : vector<40x1xf32> to vector<40x256xf32>
    %16 = vector.broadcast %14 : vector<1x256xf32> to vector<40x256xf32>
    %17 = arith.mulf %15, %16 : vector<40x256xf32>
    %18 = arith.addf %12, %17 : vector<40x256xf32>
    %c0_3 = arith.constant 0 : index
    %c0_4 = arith.constant 0 : index
    %19 = vector.load %arg3[%c0_3, %c0_4] : memref<40x1xf32, #tpu.memory_space<vmem>>, vector<40x1xf32>
    %20 = vector.broadcast %19 : vector<40x1xf32> to vector<40x256xf32>
    %21 = arith.addf %18, %20 : vector<40x256xf32>
    %cst = arith.constant 0.000000e+00 : f32
    %22 = vector.broadcast %cst : f32 to vector<40x256xf32>
    %23 = arith.maximumf %21, %22 : vector<40x256xf32>
    %c0_5 = arith.constant 0 : index
    %c0_6 = arith.constant 0 : index
    %24 = vector.load %arg4[%c0_5, %c0_6] : memref<30x40xf32, #tpu.memory_space<vmem>>, vector<30x40xf32>
    %25 = arith.truncf %24 : vector<30x40xf32> to vector<30x40xbf16>
    %26 = arith.truncf %23 : vector<40x256xf32> to vector<40x256xbf16>
    %cst_7 = arith.constant dense<0.000000e+00> : vector<30x256xf32>
    %27 = tpu.matmul %25, %26, %cst_7 {dimension_numbers = #tpu.dot_dimension_numbers<[1], [0], [0], [1], [0, 0, 1, 1], [], []>} : vector<30x40xbf16>, vector<40x256xbf16>, vector<30x256xf32> -> vector<30x256xf32>
    %c0_8 = arith.constant 0 : index
    %c0_9 = arith.constant 0 : index
    %28 = vector.load %arg5[%c0_8, %c0_9] : memref<30x1xf32, #tpu.memory_space<vmem>>, vector<30x1xf32>
    %29 = vector.broadcast %28 : vector<30x1xf32> to vector<30x256xf32>
    %30 = arith.addf %27, %29 : vector<30x256xf32>
    %cst_10 = arith.constant 0.000000e+00 : f32
    %31 = vector.broadcast %cst_10 : f32 to vector<30x256xf32>
    %32 = arith.maximumf %30, %31 : vector<30x256xf32>
    %c0_11 = arith.constant 0 : index
    %c0_12 = arith.constant 0 : index
    %33 = vector.load %arg6[%c0_11, %c0_12] : memref<1x30xf32, #tpu.memory_space<vmem>>, vector<1x30xf32>
    %34 = arith.truncf %33 : vector<1x30xf32> to vector<1x30xbf16>
    %35 = arith.truncf %32 : vector<30x256xf32> to vector<30x256xbf16>
    %cst_13 = arith.constant dense<0.000000e+00> : vector<1x256xf32>
    %36 = tpu.matmul %34, %35, %cst_13 {dimension_numbers = #tpu.dot_dimension_numbers<[1], [0], [0], [1], [0, 0, 1, 1], [], []>} : vector<1x30xbf16>, vector<30x256xbf16>, vector<1x256xf32> -> vector<1x256xf32>
    %c0_14 = arith.constant 0 : index
    %37 = memref.load %arg7[%c0_14] : memref<1xf32, #tpu.memory_space<smem>>
    %38 = vector.broadcast %37 : f32 to vector<1x256xf32>
    %39 = arith.addf %36, %38 : vector<1x256xf32>
    %cst_15 = arith.constant 0.000000e+00 : f32
    %40 = vector.broadcast %cst_15 : f32 to vector<1x256xf32>
    %41 = arith.maximumf %39, %40 : vector<1x256xf32>
    %c0_16 = arith.constant 0 : index
    %c0_17 = arith.constant 0 : index
    %42 = vector.load %arg8[%c0_16, %c0_17] : memref<1x256xf32, #tpu.memory_space<vmem>>, vector<1x256xf32>
    tpu.vector_store %arg8[%c0_16, %c0_17], %41 {strides = array<i32>} : memref<1x256xf32, #tpu.memory_space<vmem>>, vector<1x256xf32>,
    return
  }
  func.func @transform_0(%arg0: i32) -> (i32, i32) {
    %c0_i32 = arith.constant 0 : i32
    %c0_i32_0 = arith.constant 0 : i32
    return %c0_i32, %arg0 : i32, i32
  }
  func.func @transform_1(%arg0: i32) -> (i32, i32) {
    %c0_i32 = arith.constant 0 : i32
    %c0_i32_0 = arith.constant 0 : i32
    %c0_i32_1 = arith.constant 0 : i32
    return %c0_i32, %c0_i32_0 : i32, i32
  }
  func.func @transform_2(%arg0: i32) -> (i32, i32) {
    %c0_i32 = arith.constant 0 : i32
    %c0_i32_0 = arith.constant 0 : i32
    %c0_i32_1 = arith.constant 0 : i32
    return %c0_i32, %c0_i32_0 : i32, i32
  }
  func.func @transform_3(%arg0: i32) -> (i32, i32) {
    %c0_i32 = arith.constant 0 : i32
    %c0_i32_0 = arith.constant 0 : i32
    %c0_i32_1 = arith.constant 0 : i32
    return %c0_i32, %c0_i32_0 : i32, i32
  }
  func.func @transform_4(%arg0: i32) -> (i32, i32) {
    %c0_i32 = arith.constant 0 : i32
    %c0_i32_0 = arith.constant 0 : i32
    %c0_i32_1 = arith.constant 0 : i32
    return %c0_i32, %c0_i32_0 : i32, i32
  }
  func.func @transform_5(%arg0: i32) -> (i32, i32) {
    %c0_i32 = arith.constant 0 : i32
    %c0_i32_0 = arith.constant 0 : i32
    %c0_i32_1 = arith.constant 0 : i32
    return %c0_i32, %c0_i32_0 : i32, i32
  }
  func.func @transform_6(%arg0: i32) -> i32 {
    %c0_i32 = arith.constant 0 : i32
    %c0_i32_0 = arith.constant 0 : i32
    return %c0_i32 : i32
  }
  func.func @transform_7(%arg0: i32) -> (i32, i32) {
    %c0_i32 = arith.constant 0 : i32
    %c0_i32_0 = arith.constant 0 : i32
    return %c0_i32, %arg0 : i32, i32
  }
}

</mosaic_0001>

<bundles_post_ra>
// kernel: tpu_custom_call.1
= control target key start
LH: loop header
LB: loop body
LE: loop exit
PB: predicated region body
PF: predicated region fallthrough
CT: control target
= control target key end

     0   :  { %v442_v1 = vmov 2   ;;  %v443_v2 = vmov 0   ;;  %s580_s0 = inlined_call_operand.vmem [shape: f32[3,8], index: 0, kind: input, shape index: {}]   ;;  %s581_s1 = inlined_call_operand.vmem [shape: f32[40,3], index: 1, kind: input, shape index: {}]   ;;  %s582_s2 = inlined_call_operand.vmem [shape: f32[40,1], index: 2, kind: input, shape index: {}]   ;;  %s583_s3 = inlined_call_operand.vmem [shape: f32[30,40], index: 3, kind: input, shape index: {}]   ;;  %s584_s4 = inlined_call_operand.vmem [shape: f32[30,1], index: 4, kind: input, shape index: {}]   ;;  %s585_s5 = inlined_call_operand.vmem [shape: f32[1,30], index: 5, kind: input, shape index: {}]   ;;  %s586_s6 = inlined_call_operand.<no memory space> [shape: f32[1], index: 6, kind: input, shape index: {}]   ;;  %s587_s7 = inlined_call_operand.hbm [shape: f32[1,8], index: 7, kind: output, shape index: {}]  }
   0x1   :  { %v34_v0 = vld [vmem:[%s581_s1 + $0x20] sm:$0xff]  ;;  %400 = vset.pattern.permute.xlu1 %v442_v1  ;;  %399 = vset.pattern.permute.xlu0 %v443_v2  ;;  %v33_v3 = vld [vmem:[%s581_s1 + $0x18] sm:$0xff] }
   0x2   :  { %13 = vsyncpa [#allocation4], 0  ;;  %140 = vperm.xlu1 %400, %v34_v0   ;;  %57 = vperm.xlu0 %399, %v34_v0   ;;  %v32_v4 = vld [vmem:[%s581_s1 + $0x10] sm:$0xff]  ;;  %v444_v5 = vmov 1   ;;  %v173_v6 = vld [vmem:[%s582_s2 + $0x20] sm:$0xff]  ;;  %vm262_vm0 = vcmask 1043456  }
   0x3   :  { %402 = vset.pattern.permute.xlu2 %v443_v2  ;;  %v31_v7 = vld [vmem:[%s581_s1 + $0x8] sm:$0xff]  ;;  %v30_v8 = vld [vmem:[%s581_s1] sm:$0xff]  ;;  %v171_v11 = vld [vmem:[%s582_s2 + $0x10] sm:$0xff]  ;;  %vm255_vm1 = vcmask 326656   ;;  %vm327_vm2 = vcmask 1046528   ;;  %vm323_vm3 = vcmask 244736  }
   0x4   :  { %52 = vperm.xlu2 %402, %v33_v3   ;;  %v169_v9 = vld [vmem:[%s582_s2] sm:$0xff]  ;;  %v232_v10 = vld [vmem:[%s584_s4 + $0x8] sm:$0xff]  ;;  %v172_v12 = vld [vmem:[%s582_s2 + $0x18] sm:$0xff]  ;;  %vm365_vm4 = vcmask 1040384  }
   0x5   :  { %v170_v13 = vld [vmem:[%s582_s2 + $0x8] sm:$0xff]  ;;  %v233_v14 = vld [vmem:[%s584_s4 + $0x10] sm:$0xff]  ;;  %v234_v15 = vld [vmem:[%s584_s4 + $0x18] sm:$0x3f] }
   0x6   :  { %v231_v16 = vld [vmem:[%s584_s4] sm:$0xff] }
   0x7   :  { %v29_v24 = vld [vmem:[%s580_s0] sm:$0x77] }
   0x8   :  { %v61_v25 = vperm.slane %v29_v24, 0  ;;  %v62_v26 = vperm.slane %v29_v24, 4  ;;  %v97_v27 = vperm.slane %v29_v24, 1  ;;  %v98_v28 = vperm.slane %v29_v24, 5 }
   0x9   :  { %v143_v29 = vperm.slane %v29_v24, 2  ;;  %v144_v30 = vperm.slane %v29_v24, 6 }
   0xa   :  { %401 = vset.pattern.permute.xlu1 %v443_v2  ;;  %406 = vset.pattern.permute.xlu0 %v442_v1  ;;  %v531_v31 = vperm.slane %v61_v25, 0  ;;  %v533_v32 = vperm.slane %v62_v26, 0  ;;  %v101_v33 = vperm.slane %v97_v27, 1  ;;  %v102_v34 = vperm.slane %v98_v28, 1 }
   0xb   :  { %132 = vperm.xlu0 %406, %v32_v4   ;;  %47 = vperm.xlu1 %401, %v32_v4   ;;  %v535_v35 = vperm.slane %v143_v29, 2  ;;  %v537_v36 = vperm.slane %v144_v30, 2 }
   0xc   :  { %403 = vset.pattern.permute.xlu2 %v444_v5 }
   0xd   :  { %86 = vperm.xlu2 %403, %v32_v4  }
  0x13   :  { %407 = vset.pattern.permute.xlu0 %v444_v5  ;;  %404 = vset.pattern.permute.xlu1 %v444_v5 }
  0x14   :  { %94 = vperm.xlu0 %407, %v34_v0   ;;  %90 = vperm.xlu1 %404, %v33_v3  }
  0x15   :  { %405 = vset.pattern.permute.xlu2 %v443_v2 }
  0x16   :  { %196 = vperm.xlu2 %405, %v173_v6  }
  0x1c   :  { %408 = vset.pattern.permute.xlu1 %v442_v1  ;;  %82 = vperm.xlu0 %407, %v31_v7  }
  0x1d   :  { %136 = vperm.xlu1 %408, %v33_v3  }
  0x1e   :  { %37 = vperm.xlu2 %405, %v30_v8  }
  0x24   :  { %415 = vset.pattern.permute.xlu0 %v443_v2 }
  0x25   :  { %409 = vset.pattern.permute.xlu1 %v443_v2  ;;  %176 = vperm.xlu0 %415, %v169_v9  }
  0x26   :  { %42 = vperm.xlu1 %409, %v31_v7   ;;  %410 = vset.pattern.permute.xlu2 %v444_v5 }
  0x27   :  { %78 = vperm.xlu2 %410, %v30_v8  }
  0x2d   :  { %242 = vperm.xlu0 %415, %v232_v10  }
  0x2e   :  { %411 = vset.pattern.permute.xlu1 %v442_v1 }
  0x2f   :  { %124 = vperm.xlu1 %411, %v30_v8   ;;  %412 = vset.pattern.permute.xlu2 %v442_v1 }
  0x30   :  { %128 = vperm.xlu2 %412, %v31_v7  }
  0x37   :  { %413 = vset.pattern.permute.xlu1 %v443_v2 }
  0x38   :  { %186 = vperm.xlu1 %413, %v171_v11   ;;  %414 = vset.pattern.permute.xlu2 %v443_v2 }
  0x39   :  { %191 = vperm.xlu2 %414, %v172_v12  }
  0x40   :  { %181 = vperm.xlu1 %413, %v170_v13  }
  0x41   :  { %247 = vperm.xlu2 %414, %v233_v14  }
  0x48   :  { %252 = vperm.xlu1 %413, %v234_v15  }
  0x49   :  { %237 = vperm.xlu2 %414, %v231_v16  }
  0x5e   :  { %v53_v17 = vpop.permute.xlu2 %52 }
  0x5f   :  { %v73_v0 = vmul.f32 %v531_v31, %v53_v17  ;;  %v74_v1 = vmul.f32 %v533_v32, %v53_v17 }
  0x67   :  { %v87_v18 = vpop.permute.xlu2 %86 }
  0x68   :  { %v107_v4 = vmul.f32 %v101_v33, %v87_v18  ;;  %v108_v5 = vmul.f32 %v102_v34, %v87_v18 }
  0x70   :  { %v197_v21 = vpop.permute.xlu2 %196 }
  0x74   :  { %v141_v19 = vpop.permute.xlu1 %140  ;;  %v58_v20 = vpop.permute.xlu0 %57 }
  0x75   :  { %v75_v37 = vmul.f32 %v531_v31, %v58_v20  ;;  %v76_v38 = vmul.f32 %v533_v32, %v58_v20  ;;  %v157_v44 = vmul.f32 %v535_v35, %v141_v19  ;;  %v158_v45 = vmul.f32 %v537_v36, %v141_v19 }
  0x78   :  { %v38_v41 = vpop.permute.xlu2 %37 }
  0x79   :  { %v67_v20 = vmul.f32 %v531_v31, %v38_v41  ;;  %v68_v18 = vmul.f32 %v533_v32, %v38_v41 }
  0x7d   :  { %v48_v22 = vpop.permute.xlu1 %47  ;;  %v133_v23 = vpop.permute.xlu0 %132 }
  0x7e   :  { %v71_v6 = vmul.f32 %v531_v31, %v48_v22  ;;  %v72_v7 = vmul.f32 %v533_v32, %v48_v22  ;;  %v153_v16 = vmul.f32 %v535_v35, %v133_v23  ;;  %v154_v17 = vmul.f32 %v537_v36, %v133_v23 }
  0x80   :  { %v117_v14 = vadd.f32 %v107_v4, %v71_v6  ;;  %v118_v15 = vadd.f32 %v108_v5, %v72_v7  ;;  %v222_v4 = vld [vmem:[%s583_s3 + $0x18] sm:$0x3f] }
  0x81   :  { %v79_v55 = vpop.permute.xlu2 %78 }
  0x82   :  { %v104_v24 = vmul.f32 %v102_v34, %v79_v55  ;;  %v163_v23 = vadd.f32 %v153_v16, %v117_v14 }
  0x86   :  { %v95_v39 = vpop.permute.xlu0 %94  ;;  %v91_v40 = vpop.permute.xlu1 %90 }
  0x87   :  { %v111_v42 = vmul.f32 %v101_v33, %v95_v39  ;;  %v112_v43 = vmul.f32 %v102_v34, %v95_v39  ;;  %v109_v62 = vmul.f32 %v101_v33, %v91_v40  ;;  %v110_v63 = vmul.f32 %v102_v34, %v91_v40 }
  0x88   :  { %v114_v40 = vadd.f32 %v104_v24, %v68_v18 }
  0x89   :  { %v121_v46 = vadd.f32 %v111_v42, %v75_v37  ;;  %v122_v47 = vadd.f32 %v112_v43, %v76_v38  ;;  %v119_v9 = vadd.f32 %v109_v62, %v73_v0  ;;  %v120_v10 = vadd.f32 %v110_v63, %v74_v1  ;;  %v219_v62 = vld [vmem:[%s583_s3] sm:$0xff]  ;;  %v220_v63 = vld [vmem:[%s583_s3 + $0x8] sm:$0xff] }
  0x8a   :  { %v129_v61 = vpop.permute.xlu2 %128  ;;  %v164_v38 = vadd.f32 %v154_v17, %v118_v15 }
  0x8b   :  { %v167_v48 = vadd.f32 %v157_v44, %v121_v46  ;;  %v168_v49 = vadd.f32 %v158_v45, %v122_v47  ;;  %v151_v41 = vmul.f32 %v535_v35, %v129_v61 }
  0x8d   :  { %v207_v50 = vadd.f32 %v197_v21, %v167_v48  ;;  %v208_v51 = vadd.f32 %v197_v21, %v168_v49  ;;  %v103_v21 = vmul.f32 %v101_v33, %v79_v55 }
  0x8e   :  { %v83_v13 = vpop.permute.xlu0 %82 }
  0x8f   :  { %v137_v52 = vpop.permute.xlu1 %136  ;;  %v217_v53 = vmax.f32 %v207_v50, 0.0  ;;  %v218_v54 = vmax.f32 %v208_v51, 0.0  ;;  %v105_v22 = vmul.f32 %v101_v33, %v83_v13  ;;  %v106_v25 = vmul.f32 %v102_v34, %v83_v13 }
  0x90   :  { %v155_v2 = vmul.f32 %v535_v35, %v137_v52  ;;  %v156_v3 = vmul.f32 %v537_v36, %v137_v52  ;;  %v113_v39 = vadd.f32 %v103_v21, %v67_v20  ;;  %v152_v33 = vmul.f32 %v537_v36, %v129_v61 }
  0x91   :  { %v229_v56 = vpack.c.bf16 %v217_v53, %v217_v53  ;;  %v230_v57 = vpack.c.bf16 %v218_v54, %v218_v54 }
  0x92   :  { %v165_v11 = vadd.f32 %v155_v2, %v119_v9  ;;  %v166_v12 = vadd.f32 %v156_v3, %v120_v10  ;;  %v223_v2 = vpack.c.bf16 %v220_v63, %v219_v62  ;;  %v221_v3 = vld [vmem:[%s583_s3 + $0x10] sm:$0xff] }
  0x93   :  { %v264_v58 = vsel %vm262_vm0, %v229_v56, 0  ;;  %v267_v59 = vsel %vm262_vm0, %v230_v57, 0  ;;  %v192_v19 = vpop.permute.xlu2 %191  ;;  %v224_v5 = vpack.c.bf16 %v222_v4, %v221_v3 }
  0x94   :  { %274 = vmatpush.bf16.msra.mxu0 %v264_v58  ;;  %293 = vmatpush.bf16.msra.mxu1 %v267_v59  ;;  %v205_v26 = vadd.f32 %v192_v19, %v165_v11  ;;  %v206_v27 = vadd.f32 %v192_v19, %v166_v12 }
  0x96   :  { %v215_v44 = vmax.f32 %v205_v26, 0.0  ;;  %v216_v45 = vmax.f32 %v206_v27, 0.0 }
  0x97   :  { %v177_v50 = vpop.permute.xlu0 %176 }
  0x98   :  { %v43_v60 = vpop.permute.xlu1 %42 }
  0x99   :  { %v69_v28 = vmul.f32 %v531_v31, %v43_v60  ;;  %v70_v29 = vmul.f32 %v533_v32, %v43_v60 }
  0x9b   :  { %v115_v31 = vadd.f32 %v105_v22, %v69_v28  ;;  %v116_v46 = vadd.f32 %v106_v25, %v70_v29  ;;  %v248_v12 = vpop.permute.xlu2 %247 }
  0x9d   :  { %v161_v53 = vadd.f32 %v151_v41, %v115_v31  ;;  %v322_v31 = vstv %s586_s6 }
  0x9f   :  { %v243_v19 = vpop.permute.xlu0 %242 }
  0xa1   :  { %v125_v8 = vpop.permute.xlu1 %124 }
  0xa2   :  { %v149_v30 = vmul.f32 %v535_v35, %v125_v8  ;;  %v150_v37 = vmul.f32 %v537_v36, %v125_v8  ;;  %v162_v35 = vadd.f32 %v152_v33, %v116_v46 }
  0xa3   :  { %v238_v22 = vpop.permute.xlu2 %237 }
  0xa4   :  { %v159_v32 = vadd.f32 %v149_v30, %v113_v39  ;;  %v160_v47 = vadd.f32 %v150_v37, %v114_v40 }
  0xa6   :  { %v199_v54 = vadd.f32 %v177_v50, %v159_v32  ;;  %v200_v55 = vadd.f32 %v177_v50, %v160_v47 }
  0xa8   :  { %v209_v58 = vmax.f32 %v199_v54, 0.0  ;;  %v210_v59 = vmax.f32 %v200_v55, 0.0 }
  0xaa   :  { %v187_v42 = vpop.permute.xlu1 %186 }
  0xab   :  { %v203_v34 = vadd.f32 %v187_v42, %v163_v23  ;;  %v204_v43 = vadd.f32 %v187_v42, %v164_v38 }
  0xad   :  { %v213_v48 = vmax.f32 %v203_v34, 0.0  ;;  %v214_v49 = vmax.f32 %v204_v43, 0.0  ;;  %v315_v34 = vld [vmem:[%s585_s5] sm:$0x1] }
  0xaf   :  { %v227_v51 = vpack.c.bf16 %v215_v44, %v213_v48  ;;  %v228_v52 = vpack.c.bf16 %v216_v45, %v214_v49  ;;  %v316_v45 = vpack.c.bf16 %v315_v34, %v315_v34  ;;  %v368_v49 = vlaneseq }
  0xb1   :  { %275 = vmatpush.bf16.msra.mxu0 %v227_v51  ;;  %294 = vmatpush.bf16.msra.mxu1 %v228_v52  ;;  %vm370_vm5 = vcmp.lt.s32.totalorder %v368_v49, 256 }
  0xb2   :  { %v182_v36 = vpop.permute.xlu1 %181 }
  0xb3   :  { %v201_v56 = vadd.f32 %v182_v36, %v161_v53  ;;  %v202_v57 = vadd.f32 %v182_v36, %v162_v35 }
  0xb5   :  { %v211_v60 = vmax.f32 %v201_v56, 0.0  ;;  %v212_v61 = vmax.f32 %v202_v57, 0.0 }
  0xb7   :  { %v225_v0 = vpack.c.bf16 %v211_v60, %v209_v58  ;;  %v226_v1 = vpack.c.bf16 %v212_v61, %v210_v59 }
  0xb9   :  { %276 = vmatpush.bf16.msra.mxu0 %v225_v0  ;;  %295 = vmatpush.bf16.msra.mxu1 %v226_v1 }
  0xba   :  { %v253_v13 = vpop.permute.xlu1 %252 }
  0xbc   :  { %389 = vmatmul.msk.bf16.vlgmr.msra.gmra.mxu0 %vm255_vm1, %v223_v2  ;;  %391 = vmatmul.msk.bf16.vlgmr.msra.gmra.mxu1 %vm255_vm1, %v223_v2 }
  0xcc   :  { %390 = vmatmul.msk.bf16.gmra.mxu0 %vm255_vm1, %v224_v5  ;;  %392 = vmatmul.msk.bf16.gmra.mxu1 %vm255_vm1, %v224_v5 }
 0x139   :  { %v278_v6 = vpop.f32.mrf.mxu0  ;;  %v297_v7 = vpop.f32.mrf.mxu1 }
 0x13a   :  { %v279_v29 = vadd.f32 %v278_v6, %v238_v22  ;;  %v298_v30 = vadd.f32 %v297_v7, %v238_v22 }
 0x13c   :  { %v307_v41 = vmax.f32 %v279_v29, 0.0  ;;  %v308_v33 = vmax.f32 %v298_v30, 0.0 }
 0x141   :  { %v280_v8 = vpop.f32.mrf.mxu0  ;;  %v299_v9 = vpop.f32.mrf.mxu1 }
 0x142   :  { %v281_v21 = vadd.f32 %v280_v8, %v243_v19  ;;  %v300_v24 = vadd.f32 %v299_v9, %v243_v19 }
 0x144   :  { %v309_v38 = vmax.f32 %v281_v21, 0.0  ;;  %v310_v39 = vmax.f32 %v300_v24, 0.0 }
 0x146   :  { %v317_v43 = vpack.c.bf16 %v309_v38, %v307_v41  ;;  %v318_v44 = vpack.c.bf16 %v310_v39, %v308_v33 }
 0x149   :  { %v283_v10 = vpop.f32.mrf.mxu0  ;;  %v302_v11 = vpop.f32.mrf.mxu1 }
 0x14a   :  { %v284_v14 = vadd.f32 %v283_v10, %v248_v12  ;;  %v303_v15 = vadd.f32 %v302_v11, %v248_v12 }
 0x14c   :  { %v311_v25 = vmax.f32 %v284_v14, 0.0  ;;  %v312_v26 = vmax.f32 %v303_v15, 0.0 }
 0x151   :  { %v285_v16 = vpop.f32.mrf.mxu0  ;;  %v304_v17 = vpop.f32.mrf.mxu1 }
 0x152   :  { %v286_v20 = vadd.f32 %v285_v16, %v253_v13  ;;  %v305_v18 = vadd.f32 %v304_v17, %v253_v13 }
 0x154   :  { %v313_v27 = vmax.f32 %v286_v20, 0.0  ;;  %v314_v28 = vmax.f32 %v305_v18, 0.0 }
 0x156   :  { %v319_v37 = vpack.c.bf16 %v313_v27, %v311_v25  ;;  %v320_v23 = vpack.c.bf16 %v314_v28, %v312_v26 }
 0x158   :  { %v329_v40 = vsel %vm327_vm2, %v319_v37, 0  ;;  %v332_v42 = vsel %vm327_vm2, %v320_v23, 0 }
 0x159   :  { %340 = vmatpush.bf16.msra.mxu2 %v329_v40  ;;  %353 = vmatpush.bf16.msra.mxu3 %v332_v42 }
 0x15d   :  { %341 = vmatpush.bf16.msra.mxu2 %v317_v43  ;;  %354 = vmatpush.bf16.msra.mxu3 %v318_v44 }
 0x160   :  { %393 = vmatmul.msk.bf16.vlgmr.msra.gmra.mxu2 %vm323_vm3, %v316_v45  ;;  %394 = vmatmul.msk.bf16.vlgmr.msra.gmra.mxu3 %vm323_vm3, %v316_v45 }
 0x1e3   :  { %v343_v46 = vpop.f32.mrf.mxu2  ;;  %v356_v32 = vpop.f32.mrf.mxu3 }
 0x1e4   :  { %v344_v47 = vadd.f32 %v343_v46, %v322_v31  ;;  %v357_v48 = vadd.f32 %v356_v32, %v322_v31 }
 0x1e6   :  { %v361_v50 = vmax.f32 %v357_v48, 0.0  ;;  %v360_v51 = vmax.f32 %v344_v47, 0.0 }
 0x1e8   :  { %v364_v52 = vrot.slane %v361_v50, 7 }
 0x1ea   :  { %v366_v53 = vsel %vm365_vm4, %v360_v51, %v364_v52 }
 0x1eb   :  { %372 = vst.msk [vmem:[#allocation3] sm:$0x3] %vm370_vm5, %v366_v53  ;;  %v345_v54 = vpop.f32.mrf.mxu2  ;;  %v358_v55 = vpop.f32.mrf.mxu3 }
 0x1ec   :  { %376 = vsyncadd [#allocation4], 16  ;;  %s380_s16 = sshll.u32 %s587_s7, 4  ;;  %s445_s6 = smov [#allocation3]   ;;  %s381_s16 = int_to_ptr.hbm [resolvable:$true] %s380_s16 }
 0x1ed   :  { %s378_s1 = sshll.u32 %s445_s6, 4  ;;  %s379_s1 = int_to_ptr.vmem [resolvable:$true] %s378_s1 }
 0x1ee   :  { %383 = dma.vmem_to_hbm [thread:$0]  %s379_s1, 16, %s381_s16, [#allocation4]  }
 0x1ef   :  { %440 = dma.done.wait [#allocation4], 32  }
 0x1f0   :  { %441 = vsyncadd [#allocation4], 4294967264 }
 0x1f1   :  { %388 = vsyncpa [#allocation4], 1 }

</bundles_post_ra>
